<compile_context>
chip_gen: v7x
topology: tpu7x:2x2x1
jax: 0.10.0
libtpu: 0.0.40
codegen_flags: <defaults>
</compile_context>

<pallas_src>
import functools

import jax
import jax.numpy as jnp
from jax.experimental import pallas as pl
from jax.experimental.pallas import tpu as pltpu


def _conv3_fused(xf, w_ref, b_ref, mask_first, mask_last):
    """k=3, pad=1 conv1d on a channel-major (C_in, TB*L) tile via ONE matmul.

    xf        : (C_in, TB*L) f32
    w_ref     : Ref (C_out, 3*C_in)  -- tap-stacked weights [tap0 | tap1 | tap2]
    b_ref     : Ref (C_out, 1) f32
    mask_first: (C_in, TB*L) bool, True where col % L == 0      (l == 0)
    mask_last : (C_in, TB*L) bool, True where col % L == L - 1  (l == L-1)
    returns   : (C_out, TB*L) f32
    """
    c, _ = xf.shape
    zero_col = jnp.zeros((c, 1), xf.dtype)
    # x[:, l-1] (zero at per-sample l==0) and x[:, l+1] (zero at per-sample
    # l==L-1), built as lane-shifted views; the masks supply the zero padding
    # at every sample boundary inside the flattened multi-sample tile.
    x_m1 = jnp.where(mask_first, 0.0,
                     jnp.concatenate([zero_col, xf[:, :-1]], axis=1))
    x_p1 = jnp.where(mask_last, 0.0,
                     jnp.concatenate([xf[:, 1:], zero_col], axis=1))
    x_stacked = jnp.concatenate([x_m1, xf, x_p1], axis=0)          # (3*C_in, TB*L)
    out = jnp.dot(w_ref[...], x_stacked.astype(w_ref.dtype),
                  preferred_element_type=jnp.float32)              # single MXU pass
    return out + b_ref[...]                                        # (C_out,1) bcast


def residual_block_kernel(x_ref, w1_ref, b1_ref, w2_ref, b2_ref, o_ref, *, L):
    x = x_ref[...].astype(jnp.float32)                             # (C, TB*L)
    c, n = x.shape
    # Per-sample boundary masks (computed once, reused by both convs).
    col = jax.lax.broadcasted_iota(jnp.int32, (c, n), 1)
    pos = col % L
    mask_first = pos == 0
    mask_last = pos == (L - 1)

    h = jnp.maximum(_conv3_fused(x, w1_ref, b1_ref, mask_first, mask_last), 0.0)
    y = _conv3_fused(h, w2_ref, b2_ref, mask_first, mask_last) + x
    o_ref[...] = y.astype(o_ref.dtype)


def residual_block(x, w1, b1, w2, b2, *, mxu_dtype=jnp.float32,
                   vmem_budget_bytes=20 * 1024 * 1024):
    """x: (B, C, L) f32; w*: (C, C, 3) PyTorch Conv1d weights; b*: (C,)."""
    B, C, L = x.shape

    # Channel-major, lane-dense layout: xf[:, b*L + l] = x[b, :, l]
    xf = jnp.transpose(x, (1, 0, 2)).reshape(C, B * L)

    # Tap-stacked weights (C_out, 3*C_in): column block k multiplies x[:, l+k-1]
    # (matches PyTorch cross-correlation with pad=1).  Cast once in the wrapper.
    w1s = jnp.transpose(w1, (0, 2, 1)).reshape(C, 3 * C).astype(mxu_dtype)
    w2s = jnp.transpose(w2, (0, 2, 1)).reshape(C, 3 * C).astype(mxu_dtype)
    b1c = b1.reshape(C, 1).astype(jnp.float32)
    b2c = b2.reshape(C, 1).astype(jnp.float32)

    # --- samples per grid step (TB) --------------------------------------
    # Rough per-sample VMEM cost: in/out tiles double-buffered (4x C*L*4) plus
    # stacked views / h intermediates (~8x C*L*4)  =>  ~12 * C * L * 4 bytes.
    per_sample = 12 * C * L * 4
    tb = max(1, min(B, vmem_budget_bytes // per_sample))
    if B >= 2:                       # keep >= 2 grid steps so v7x's 2 TCs both work
        tb = min(tb, max(1, B // 2))
    while B % tb != 0:               # even division -> no partial tiles
        tb -= 1
    grid = (B // tb,)
    blk = tb * L

    kernel = functools.partial(residual_block_kernel, L=L)
    out_flat = pl.pallas_call(
        kernel,
        out_shape=jax.ShapeDtypeStruct((C, B * L), x.dtype),
        grid_spec=pltpu.PrefetchScalarGridSpec(
            num_scalar_prefetch=0,
            grid=grid,
            in_specs=[
                pl.BlockSpec((C, blk), lambda i: (0, i)),      # x, TB samples/step
                pl.BlockSpec((C, 3 * C), lambda i: (0, 0)),    # W1 (resident)
                pl.BlockSpec((C, 1), lambda i: (0, 0)),        # b1
                pl.BlockSpec((C, 3 * C), lambda i: (0, 0)),    # W2
                pl.BlockSpec((C, 1), lambda i: (0, 0)),        # b2
            ],
            out_specs=pl.BlockSpec((C, blk), lambda i: (0, i)),
        ),
        compiler_params=pltpu.CompilerParams(
            dimension_semantics=("parallel",),
            vmem_limit_bytes=48 * 1024 * 1024,
        ),
    )(xf, w1s, b1c, w2s, b2c)

    return out_flat.reshape(C, B, L).transpose(1, 0, 2)


def _reference(x, w1, b1, w2, b2):
    """Pure-JAX reference using lax.conv_general_dilated (NCL layout)."""
    def conv(inp, w, b):
        out = jax.lax.conv_general_dilated(
            inp, w, window_strides=(1,), padding=((1, 1),),
            dimension_numbers=("NCH", "OIH", "NCH"))
        return out + b[None, :, None]
    h = jnp.maximum(conv(x, w1, b1), 0.0)
    return conv(h, w2, b2) + x


if __name__ == "__main__":
    B, C, L = 4, 8, 128   # small, TPU-friendly (C -> sublanes, L -> lanes)

    key = jax.random.PRNGKey(0)
    kx, k1, k2, k3, k4 = jax.random.split(key, 5)
    x = jax.random.normal(kx, (B, C, L), dtype=jnp.float32)
    # Deterministic parameter init (shapes from nn.Conv1d(C, C, 3)).
    scale = 1.0 / (C * 3) ** 0.5
    w1 = jax.random.uniform(k1, (C, C, 3), jnp.float32, -scale, scale)
    b1 = jax.random.uniform(k2, (C,), jnp.float32, -scale, scale)
    w2 = jax.random.uniform(k3, (C, C, 3), jnp.float32, -scale, scale)
    b2 = jax.random.uniform(k4, (C,), jnp.float32, -scale, scale)

    ref = _reference(x, w1, b1, w2, b2)

    # f32 MXU operands (default, exact path)
    out = jax.block_until_ready(residual_block(x, w1, b1, w2, b2))
    assert out.shape == (B, C, L)
    assert jnp.allclose(out, ref, atol=1e-4, rtol=1e-4), "f32 mismatch vs reference"

    # bf16 MXU operands (v6e/v7x fast path); f32 accumulate + f32 elementwise
    out_bf16 = jax.block_until_ready(
        residual_block(x, w1, b1, w2, b2, mxu_dtype=jnp.bfloat16))
    assert jnp.allclose(out_bf16, ref, atol=1e-1, rtol=1e-1), "bf16 mismatch vs reference"

    print("KERNEL_OK")
</pallas_src>

<mosaic_0001>
module attributes {stable_mosaic.version = 11 : i64} {
  func.func @residual_block_kernel(%arg0: i32, %arg1: memref<8x256xf32, #tpu.memory_space<vmem>>, %arg2: memref<8x24xf32, #tpu.memory_space<vmem>>, %arg3: memref<8x1xf32, #tpu.memory_space<vmem>>, %arg4: memref<8x24xf32, #tpu.memory_space<vmem>>, %arg5: memref<8x1xf32, #tpu.memory_space<vmem>>, %arg6: memref<8x256xf32, #tpu.memory_space<vmem>>) attributes {dimension_semantics = [#tpu.dimension_semantics<parallel>], iteration_bounds = array<i64: 2>, scalar_prefetch = 0 : i64, scratch_operands = 0 : i64, tpu.core_type = #tpu.core_type<tc>, window_params = [{transform_indices = @transform_0, window_bounds = array<i64: 8, 256>}, {pipeline_mode = #tpu.pipeline_mode<synchronous>, transform_indices = @transform_1, window_bounds = array<i64: 8, 24>}, {pipeline_mode = #tpu.pipeline_mode<synchronous>, transform_indices = @transform_2, window_bounds = array<i64: 8, 1>}, {pipeline_mode = #tpu.pipeline_mode<synchronous>, transform_indices = @transform_3, window_bounds = array<i64: 8, 24>}, {pipeline_mode = #tpu.pipeline_mode<synchronous>, transform_indices = @transform_4, window_bounds = array<i64: 8, 1>}, {transform_indices = @transform_5, window_bounds = array<i64: 8, 256>}]} {
    %c0 = arith.constant 0 : index
    %c0_0 = arith.constant 0 : index
    %0 = vector.load %arg1[%c0, %c0_0] : memref<8x256xf32, #tpu.memory_space<vmem>>, vector<8x256xf32>
    %1 = tpu.iota {dimensions = array<i32: 1>} : vector<8x256xi32>
    %c128_i32 = arith.constant 128 : i32
    %c0_i32 = arith.constant 0 : i32
    %2 = arith.cmpi eq, %c128_i32, %c0_i32 : i32
    %c1_i32 = arith.constant 1 : i32
    %3 = arith.select %2, %c1_i32, %c128_i32 : i32
    %4 = vector.broadcast %3 : i32 to vector<8x256xi32>
    %5 = arith.remsi %1, %4 : vector<8x256xi32>
    %c0_i32_1 = arith.constant 0 : i32
    %6 = vector.broadcast %c0_i32_1 : i32 to vector<8x256xi32>
    %7 = arith.cmpi ne, %5, %6 : vector<8x256xi32>
    %c0_i32_2 = arith.constant 0 : i32
    %8 = vector.broadcast %c0_i32_2 : i32 to vector<8x256xi32>
    %9 = arith.cmpi slt, %5, %8 : vector<8x256xi32>
    %c0_i32_3 = arith.constant 0 : i32
    %10 = arith.cmpi slt, %3, %c0_i32_3 : i32
    %11 = vector.broadcast %10 : i1 to vector<8x256xi1>
    %12 = vector.broadcast %11 : vector<8x256xi1> to vector<8x256xi1>
    %13 = arith.xori %9, %12 : vector<8x256xi1>
    %14 = arith.andi %13, %7 : vector<8x256xi1>
    %15 = vector.broadcast %3 : i32 to vector<8x256xi32>
    %16 = arith.addi %5, %15 : vector<8x256xi32>
    %17 = arith.select %14, %16, %5 : vector<8x256xi1>, vector<8x256xi32>
    %c0_i32_4 = arith.constant 0 : i32
    %18 = vector.broadcast %c0_i32_4 : i32 to vector<8x256xi32>
    %19 = arith.cmpi eq, %17, %18 : vector<8x256xi32>
    %c127_i32 = arith.constant 127 : i32
    %20 = vector.broadcast %c127_i32 : i32 to vector<8x256xi32>
    %21 = arith.cmpi eq, %17, %20 : vector<8x256xi32>
    %cst = arith.constant 0.000000e+00 : f32
    %22 = vector.broadcast %cst : f32 to vector<8x1xf32>
    %23 = vector.extract_strided_slice %0 {offsets = [0, 0], sizes = [8, 255], strides = [1, 1]} : vector<8x256xf32> to vector<8x255xf32>
    %24 = tpu.concatenate %22, %23 in 1 : vector<8x1xf32>, vector<8x255xf32> -> vector<8x256xf32>
    %cst_5 = arith.constant 0.000000e+00 : f32
    %25 = vector.broadcast %cst_5 : f32 to vector<8x256xf32>
    %26 = arith.select %19, %25, %24 : vector<8x256xi1>, vector<8x256xf32>
    %27 = vector.extract_strided_slice %0 {offsets = [0, 1], sizes = [8, 255], strides = [1, 1]} : vector<8x256xf32> to vector<8x255xf32>
    %28 = tpu.concatenate %27, %22 in 1 : vector<8x255xf32>, vector<8x1xf32> -> vector<8x256xf32>
    %cst_6 = arith.constant 0.000000e+00 : f32
    %29 = vector.broadcast %cst_6 : f32 to vector<8x256xf32>
    %30 = arith.select %21, %29, %28 : vector<8x256xi1>, vector<8x256xf32>
    %31 = tpu.concatenate %26, %0, %30 in 0 : vector<8x256xf32>, vector<8x256xf32>, vector<8x256xf32> -> vector<24x256xf32>
    %c0_7 = arith.constant 0 : index
    %c0_8 = arith.constant 0 : index
    %32 = vector.load %arg2[%c0_7, %c0_8] : memref<8x24xf32, #tpu.memory_space<vmem>>, vector<8x24xf32>
    %cst_9 = arith.constant dense<0.000000e+00> : vector<8x256xf32>
    %33 = tpu.matmul %32, %31, %cst_9 {dimension_numbers = #tpu.dot_dimension_numbers<[1], [0], [0], [1], [0, 0, 1, 1], [], []>} : vector<8x24xf32>, vector<24x256xf32>, vector<8x256xf32> -> vector<8x256xf32>
    %c0_10 = arith.constant 0 : index
    %c0_11 = arith.constant 0 : index
    %34 = vector.load %arg3[%c0_10, %c0_11] : memref<8x1xf32, #tpu.memory_space<vmem>>, vector<8x1xf32>
    %35 = vector.broadcast %34 : vector<8x1xf32> to vector<8x256xf32>
    %36 = arith.addf %33, %35 : vector<8x256xf32>
    %cst_12 = arith.constant 0.000000e+00 : f32
    %37 = vector.broadcast %cst_12 : f32 to vector<8x256xf32>
    %38 = arith.maximumf %36, %37 : vector<8x256xf32>
    %cst_13 = arith.constant 0.000000e+00 : f32
    %39 = vector.broadcast %cst_13 : f32 to vector<8x1xf32>
    %40 = vector.extract_strided_slice %38 {offsets = [0, 0], sizes = [8, 255], strides = [1, 1]} : vector<8x256xf32> to vector<8x255xf32>
    %41 = tpu.concatenate %39, %40 in 1 : vector<8x1xf32>, vector<8x255xf32> -> vector<8x256xf32>
    %cst_14 = arith.constant 0.000000e+00 : f32
    %42 = vector.broadcast %cst_14 : f32 to vector<8x256xf32>
    %43 = arith.select %19, %42, %41 : vector<8x256xi1>, vector<8x256xf32>
    %44 = vector.extract_strided_slice %38 {offsets = [0, 1], sizes = [8, 255], strides = [1, 1]} : vector<8x256xf32> to vector<8x255xf32>
    %45 = tpu.concatenate %44, %39 in 1 : vector<8x255xf32>, vector<8x1xf32> -> vector<8x256xf32>
    %cst_15 = arith.constant 0.000000e+00 : f32
    %46 = vector.broadcast %cst_15 : f32 to vector<8x256xf32>
    %47 = arith.select %21, %46, %45 : vector<8x256xi1>, vector<8x256xf32>
    %48 = tpu.concatenate %43, %38, %47 in 0 : vector<8x256xf32>, vector<8x256xf32>, vector<8x256xf32> -> vector<24x256xf32>
    %c0_16 = arith.constant 0 : index
    %c0_17 = arith.constant 0 : index
    %49 = vector.load %arg4[%c0_16, %c0_17] : memref<8x24xf32, #tpu.memory_space<vmem>>, vector<8x24xf32>
    %cst_18 = arith.constant dense<0.000000e+00> : vector<8x256xf32>
    %50 = tpu.matmul %49, %48, %cst_18 {dimension_numbers = #tpu.dot_dimension_numbers<[1], [0], [0], [1], [0, 0, 1, 1], [], []>} : vector<8x24xf32>, vector<24x256xf32>, vector<8x256xf32> -> vector<8x256xf32>
    %c0_19 = arith.constant 0 : index
    %c0_20 = arith.constant 0 : index
    %51 = vector.load %arg5[%c0_19, %c0_20] : memref<8x1xf32, #tpu.memory_space<vmem>>, vector<8x1xf32>
    %52 = vector.broadcast %51 : vector<8x1xf32> to vector<8x256xf32>
    %53 = arith.addf %50, %52 : vector<8x256xf32>
    %54 = arith.addf %53, %0 : vector<8x256xf32>
    %c0_21 = arith.constant 0 : index
    %c0_22 = arith.constant 0 : index
    %55 = vector.load %arg6[%c0_21, %c0_22] : memref<8x256xf32, #tpu.memory_space<vmem>>, vector<8x256xf32>
    tpu.vector_store %arg6[%c0_21, %c0_22], %54 {strides = array<i32>} : memref<8x256xf32, #tpu.memory_space<vmem>>, vector<8x256xf32>,
    return
  }
  func.func @transform_0(%arg0: i32) -> (i32, i32) {
    %c0_i32 = arith.constant 0 : i32
    %c0_i32_0 = arith.constant 0 : i32
    return %c0_i32, %arg0 : i32, i32
  }
  func.func @transform_1(%arg0: i32) -> (i32, i32) {
    %c0_i32 = arith.constant 0 : i32
    %c0_i32_0 = arith.constant 0 : i32
    %c0_i32_1 = arith.constant 0 : i32
    return %c0_i32, %c0_i32_0 : i32, i32
  }
  func.func @transform_2(%arg0: i32) -> (i32, i32) {
    %c0_i32 = arith.constant 0 : i32
    %c0_i32_0 = arith.constant 0 : i32
    %c0_i32_1 = arith.constant 0 : i32
    return %c0_i32, %c0_i32_0 : i32, i32
  }
  func.func @transform_3(%arg0: i32) -> (i32, i32) {
    %c0_i32 = arith.constant 0 : i32
    %c0_i32_0 = arith.constant 0 : i32
    %c0_i32_1 = arith.constant 0 : i32
    return %c0_i32, %c0_i32_0 : i32, i32
  }
  func.func @transform_4(%arg0: i32) -> (i32, i32) {
    %c0_i32 = arith.constant 0 : i32
    %c0_i32_0 = arith.constant 0 : i32
    %c0_i32_1 = arith.constant 0 : i32
    return %c0_i32, %c0_i32_0 : i32, i32
  }
  func.func @transform_5(%arg0: i32) -> (i32, i32) {
    %c0_i32 = arith.constant 0 : i32
    %c0_i32_0 = arith.constant 0 : i32
    return %c0_i32, %arg0 : i32, i32
  }
}

</mosaic_0001>

<bundles_post_ra>
// kernel: tpu_custom_call.1
= control target key start
LH: loop header
LB: loop body
LE: loop exit
PB: predicated region body
PF: predicated region fallthrough
CT: control target
= control target key end

     0   :  { %10 = vsyncpa [#allocation3], 0  ;;  %s1055_s0 = inlined_call_operand.hbm [shape: f32[8,512], index: 0, kind: input, shape index: {}]   ;;  %s1056_s1 = inlined_call_operand.vmem [shape: f32[8,24], index: 1, kind: input, shape index: {}]   ;;  %s1057_s2 = inlined_call_operand.vmem [shape: f32[8,1], index: 2, kind: input, shape index: {}]   ;;  %s1058_s3 = inlined_call_operand.vmem [shape: f32[8,24], index: 3, kind: input, shape index: {}]   ;;  %s1059_s4 = inlined_call_operand.vmem [shape: f32[8,1], index: 4, kind: input, shape index: {}]   ;;  %s1060_s5 = inlined_call_operand.hbm [shape: f32[8,512], index: 5, kind: output, shape index: {}]  }
   0x1   :  { %12 = vsyncpa [#allocation3 + $0x1], 0 }
   0x2   :  { %13 = vsyncpa [#allocation4], 0 }
   0x3   :  { %15 = vsyncpa [#allocation4 + $0x1], 0  ;;  %s824_s18 = smov 0   ;;  %s826_s19 = smov 0  }
   0x4   :  { %s828_s20 = smov 0   ;;  %s830_s21 = smov 0  }
   0x5 LB: > { %s845_s22 = sadd.s32 4294967295, %s785_s21   ;;  %s576_s23 = sadd.s32 4294967294, %s785_s21   ;;  %s785_s21 = sphi %s830_s21, %s1081_s21   ;;  %s781_s20 = sphi %s828_s20, %s1080_s20   ;;  %s777_s19 = sphi %s826_s19, %s1079_s19   ;;  %s773_s18 = sphi %s824_s18, %s1078_s18  }
   0x6   : > { %s849_s24 = sadd.s32 1, %s785_s21   ;;  %s28_s25 = sadd.s32 1, %s781_s20 }
   0x7   : > { %s25_s26 = ssub.s32 %s785_s21, %s849_s24  ;;  %p35_p0 = scmp.ne.s32.totalorder %s781_s20, %s777_s19 }
   0x8   : > { %p26_p1 = scmp.eq.s32.totalorder %s25_s26, 0  ;;  %p36_p2 = scmp.eq.s32.totalorder %s785_s21, 0 }
   0x9   : > { %p41_p3 = scmp.ne.s32.totalorder %s777_s19, %s773_s18  ;;  %p42_p4 = scmp.eq.s32.totalorder %s845_s22, 0 }
   0xa   : > { %s861_s27 = scalar_select %p26_p1, %s781_s20, %s28_s25  }
   0xb   : > { %p863_p5 = por %p36_p2, %p35_p0  ;;  %p867_p6 = por %p42_p4, %p41_p3 }
   0xc   : > { %p149_p7 = scmp.eq.s32.totalorder %s845_s22, 1  ;;  %p155_p8 = scmp.eq.s32.totalorder %s576_s23, 1 }
   0xd   : > { %p638_p10 = scmp.lt.s32.totalorder %s785_s21, 2  ;;  %s187_s7 = sand.u32 1, %s781_s20  }
   0xe   : > { %p874_p11 = por %p149_p7, %p35_p0  ;;  %p878_p12 = por %p155_p8, %p41_p3 }
   0xf   : > { %s608_s8 = sshll.u32 %s785_s21, 8  ;;  %s579_s9 = sshll.u32 %s187_s7, 4 }
  0x10   : > { %s1064_s30 = scalar_select %p874_p11, 1, 0 }
  0x11   : > { %s1065_s6 = scalar_select %p878_p12, 1, 0 }
  0x12   : > { %s887_s12 = scalar_lea.hbm %s1055_s0, %s608_s8  ;;  %s191_s13 = scalar_lea.vmem [#allocation2], %s579_s9 }
  0x13   : > { %s199_s14 = sshll.u32 %s191_s13, 4  ;;  %p891_p13 = pnand %p638_p10, %p863_p5  ;;  %s895_s14 = int_to_ptr.vmem [resolvable:$true] %s199_s14 }
  0x14   : > { %s188_s16 = scalar_lea.sflag [#allocation3], %s187_s7  ;;  %s689_s17 = scalar_lea.hbm %s887_s12, 256 }
  0x15   : > { %p690_p2 = scmp.ne.s32.totalorder %s887_s12, %s689_s17  ;;  %p691_p3 = pneg %p891_p13 }
  0x16   : > { %s694_s26 = scalar_lea.hbm %s1055_s0, 512  ;;  %p695_p5 = scmp.lt.u32.totalorder %s887_s12, %s1055_s0 }
  0x17   : > { %p692_p4 = pnand %p691_p3, %p690_p2  ;;  %p696_p8 = scmp.lt.u32.totalorder %s694_s26, %s689_s17 }
  0x18   : > { %p698_p9 = scmp.lt.u32.totalorder %s689_s17, %s887_s12 }
  0x19   : > { %p693_p7 = pneg %p692_p4  ;;  %p697_p10 = por %p696_p8, %p695_p5 }
  0x1b   : > { %p699_p0 = por %p698_p9, %p697_p10 }
  0x1d   : > { %p700_p1 = pnand %p699_p0, %p693_p7 }
  0x1f   : > { %703 = shalt.err (!%p700_p1)
}
  0x20   : > { %s704_s7 = scalar_lea.vmem %s895_s14, 256  ;;  %s787_s9 = smov [#allocation2]  }
  0x21   : > { %p705_p2 = scmp.ne.s32.totalorder %s895_s14, %s704_s7  ;;  %s709_s10 = sshll.u32 %s787_s9, 4  ;;  %s710_s10 = int_to_ptr.vmem [resolvable:$false] %s709_s10 }
  0x22   : > { %s711_s11 = scalar_lea.vmem %s710_s10, 512  ;;  %p712_p11 = scmp.lt.s32.totalorder %s895_s14, %s710_s10 }
  0x23   : > { %p707_p4 = pnand %p705_p2, %p691_p3  ;;  %p713_p5 = scmp.lt.s32.totalorder %s711_s11, %s704_s7 }
  0x25   : > { %p708_p12 = pneg %p707_p4  ;;  %p714_p8 = por %p713_p5, %p712_p11 }
  0x27   : > { %p715_p9 = pnand %p714_p8, %p708_p12 }
  0x29   : > { %718 = shalt.err (!%p715_p9)
}
  0x2a   : > { %633 = dma.hbm_to_vmem [thread:$0]  (!%p891_p13), %s887_s12, 256, %s895_s14, %s188_s16  }
  0x2b   : > { %p1067_p0 = scmp.lt.s32.totalorder %s785_s21, 3  ;;  %p1068_p1 = scmp.ge.s32.totalorder %s785_s21, 1 }
  0x2d   : > { %p205_p3 = pnand %p1068_p1, %p1067_p0 }
  0x2e   : > { %s929_s13 = sand.u32 (!%p205_p3), 1, %s777_s19  }
  0x2f   : > { %208 = sbr.rel (%p205_p3) target bundleno = 760 (0x2f8), region = 40  ;;  %s583_s17 = sshll.u32 (!%p205_p3), %s929_s13, 4 }
  0x30   : > { %s211_s23 = scalar_lea.sflag (!%p205_p3), [#allocation3], %s929_s13  ;;  %s214_s15 = scalar_lea.vmem (!%p205_p3), [#allocation2], %s583_s17 }
  0x36   : > { %764 = dma.done.wait (%p867_p6), %s211_s23, 256  }
  0x37   : > { %766 = vsyncadd (%p867_p6), %s211_s23, 4294967040  ;;  %v939_v0 = vld [vmem:[%s214_s15] sm:$0xff]  ;;  %v941_v1 = vld [vmem:[%s214_s15 + $0x8] sm:$0xff]  ;;  %v788_v2 = vmov 0.0   ;;  %s789_s12 = smov 127   ;;  %v790_v4 = vmov 0   ;;  %v245_v6 = vlaneseq }
  0x38   : > { %375 = vmatprep.mubr.f32.mxu0 %v788_v2  ;;  %480 = vmatprep.mubr.f32.mxu1 %v788_v2  ;;  %v677_v3 = vpack.i.bf16 %v941_v1, %v939_v0  ;;  %v301_v5 = vld [vmem:[%s1057_s2] sm:$0xff]  ;;  %s791_s29 = smov 1   ;;  %vm282_vm0 = vcmask 7168   ;;  %vm293_vm3 = vcmask 1039360   ;;  %vm792_vm4 = vmmov 1   ;;  %s609_s10 = sshll.u32 %s845_s22, 8 }
  0x39   : > { %289 = vrot.lane.b32.xlu1 %v939_v0, %s789_s12  ;;  %688 = vset.pattern.permute.xlu0 %v790_v4  ;;  %v246_v7 = vand.u32 127, %v245_v6  ;;  %v300_v24 = vld [vmem:[%s1056_s1] sm:$0xff]  ;;  %vm307_vm9 = vcmask 195584   ;;  %s240_s11 = scalar_lea.vmem [#allocation5], %s583_s17  ;;  %s1011_s14 = scalar_lea.hbm %s1060_s5, %s609_s10 }
  0x3a   : > { %682 = vset.pattern.permute.xlu1 %v790_v4  ;;  %678 = vrot.lane.b32.xlu0 %v677_v3, %s791_s29  ;;  %v407_v33 = vld [vmem:[%s1059_s4] sm:$0xff]  ;;  %s506_s23 = sshll.u32 %s240_s11, 4  ;;  %s492_s22 = scalar_lea.sflag [#allocation4], %s929_s13  ;;  %s1013_s23 = int_to_ptr.vmem [resolvable:$true] %s506_s23 }
  0x3b   : > { %v247_v8 = vadd.s32 128, %v246_v7  ;;  %vm611_vm2 = vcmp.ne.s32.totalorder %v246_v7, 0  ;;  %vm613_vm8 = vcmp.ne.s32.totalorder %v246_v7, 127  ;;  %v406_v44 = vld [vmem:[%s1058_s3] sm:$0xff]  ;;  %s719_s17 = scalar_lea.vmem %s1013_s23, 256  ;;  %p1075_p11 = scmp.ne.s32.totalorder %s1064_s30, 0 }
  0x3c   : > { %vm961_vm6 = vmpackc.low %vm792_vm4, %vm611_vm2  ;;  %p720_p6 = scmp.ne.s32.totalorder %s1013_s23, %s719_s17  ;;  %s793_s16 = smov [#allocation5]  }
  0x3d   : > { %304 = vperm.xlu1 %682, %v301_v5   ;;  %v259_v9 = vand.u32 127, %v247_v8 }
  0x3e   : > { %291 = vrot.lane.b32.xlu0 %v941_v1, %s789_s12  ;;  %p721_p12 = pnand %p720_p6, %p1075_p11 }
  0x3f   : > { %vm610_vm1 = vcmp.ne.s32.totalorder %v259_v9, 0  ;;  %vm966_vm7 = vcmp.ne.s32.totalorder %v259_v9, 127 }
  0x40   : > { %vm955_vm5 = vmpackc.low %vm792_vm4, %vm610_vm1  ;;  %p722_p13 = pneg %p721_p12 }
  0xab   : > { %v290_v20 = vpop.permute.xlu1 %289 }
  0xac   : > { %v679_v10 = vpop.permute.xlu0 %678 }
  0xad   : > { %v681_v11 = vunpack.i.h.bf16 %v679_v10  ;;  %v680_v12 = vunpack.i.l.bf16 %v679_v10 }
  0xaf   : > { %v286_v13 = vsel %vm282_vm0, 0.0, %v680_v12  ;;  %v283_v14 = vsel %vm282_vm0, %v680_v12, %v681_v11 }
  0xb0   : > { %v614_v16 = vpack.c.bf16 %v941_v1, %v283_v14  ;;  %v617_v17 = vpack.c.bf16 %v939_v0, %v286_v13  ;;  %v292_v19 = vpop.permute.xlu0 %291 }
  0xb1   : > { %v297_v21 = vsel %vm293_vm3, %v292_v19, 0.0  ;;  %v294_v23 = vsel %vm293_vm3, %v290_v20, %v292_v19 }
  0xb2   : > { %616 = vmatprep.subr.msk.bf16.mxu0 %vm955_vm5, %v614_v16 }
  0xb3   : > { %619 = vmatpush1.bf16.msk.msra.mxu0 %vm961_vm6, %v617_v17 }
  0xb4   : > { %590 = vmatprep.subr.msk.mxu0 %vm966_vm7, %v297_v21 }
  0xb7   : > { %592 = vmatpush1.msk.msra.mxu0 %vm613_vm8, %v294_v23 }
  0xb8   : > { %593 = vmatmul.mubr.msk.f32.vlgmr.msra.gmra.mrb[0].mxu0 %vm307_vm9, %v300_v24 }
  0xbc   : > { %v305_v25 = vpop.permute.xlu1 %304 }
 0x18b   : > { %v377_v26 = vpop.f32.mrb[0].mxu0 }
 0x18c   : > { %v378_v27 = vadd.f32 %v377_v26, %v305_v25  ;;  %v379_v28 = vpop.f32.mrb[1].mxu0 }
 0x18d   : > { %v380_v29 = vadd.f32 %v379_v28, %v305_v25 }
 0x18e   : > { %v382_v30 = vmax.f32 %v378_v27, 0.0 }
 0x18f   : > { %v383_v31 = vmax.f32 %v380_v29, 0.0 }
 0x191   : > { %398 = vrot.lane.b32.xlu1 %v383_v31, %s789_s12  ;;  %v683_v32 = vpack.i.bf16 %v383_v31, %v382_v30 }
 0x193   : > { %684 = vrot.lane.b32.xlu0 %v683_v32, %s791_s29  ;;  %s723_s29 = sshll.u32 %s793_s16, 4  ;;  %s724_s29 = int_to_ptr.vmem [resolvable:$false] %s723_s29 }
 0x194   : > { %s725_s25 = scalar_lea.vmem %s724_s29, 512  ;;  %p726_p7 = scmp.lt.s32.totalorder %s1013_s23, %s724_s29 }
 0x195   : > { %410 = vperm.xlu1 %682, %v407_v33   ;;  %p727_p10 = scmp.lt.s32.totalorder %s725_s25, %s719_s17 }
 0x197   : > { %396 = vrot.lane.b32.xlu0 %v382_v30, %s789_s12  ;;  %p728_p2 = por %p727_p10, %p726_p7 }
 0x199   : > { %p729_p4 = pnand %p728_p2, %p722_p13 }
 0x203   : > { %v399_v39 = vpop.permute.xlu1 %398 }
 0x204   : > { %v403_v42 = vsel %vm293_vm3, %v399_v39, 0.0 }
 0x205   : > { %v685_v34 = vpop.permute.xlu0 %684 }
 0x206   : > { %v687_v35 = vunpack.i.h.bf16 %v685_v34  ;;  %v686_v36 = vunpack.i.l.bf16 %v685_v34 }
 0x208   : > { %v393_v37 = vsel %vm282_vm0, 0.0, %v686_v36  ;;  %v390_v38 = vsel %vm282_vm0, %v686_v36, %v687_v35 }
 0x209   : > { %v620_v40 = vpack.c.bf16 %v383_v31, %v390_v38  ;;  %v623_v41 = vpack.c.bf16 %v382_v30, %v393_v37  ;;  %v397_v43 = vpop.permute.xlu0 %396 }
 0x20a   : > { %v400_v45 = vsel %vm293_vm3, %v397_v43, %v399_v39 }
 0x20b   : > { %622 = vmatprep.subr.msk.bf16.mxu1 %vm955_vm5, %v620_v40 }
 0x20c   : > { %625 = vmatpush1.bf16.msk.msra.mxu1 %vm961_vm6, %v623_v41 }
 0x20d   : > { %599 = vmatprep.subr.msk.mxu1 %vm966_vm7, %v403_v42 }
 0x210   : > { %601 = vmatpush1.msk.msra.mxu1 %vm613_vm8, %v400_v45 }
 0x211   : > { %602 = vmatmul.mubr.msk.f32.vlgmr.msra.gmra.mrb[0].mxu1 %vm307_vm9, %v406_v44 }
 0x214   : > { %v411_v46 = vpop.permute.xlu1 %410 }
 0x2e4   : > { %v482_v47 = vpop.f32.mrb[0].mxu1 }
 0x2e5   : > { %v483_v48 = vadd.f32 %v482_v47, %v411_v46  ;;  %v484_v49 = vpop.f32.mrb[1].mxu1 }
 0x2e6   : > { %v485_v50 = vadd.f32 %v484_v49, %v411_v46 }
 0x2e7   : > { %v487_v51 = vadd.f32 %v483_v48, %v939_v0 }
 0x2e8   : > { %v488_v52 = vadd.f32 %v485_v50, %v941_v1 }
 0x2e9   : > { %489 = vst [vmem:[%s240_s11] sm:$0xff] %v487_v51 }
 0x2ea   : > { %490 = vst [vmem:[%s240_s11 + $0x8] sm:$0xff] %v488_v52 }
 0x2eb   : > { %732 = shalt.err (!%p729_p4)
}
 0x2ec   : > { %s733_s13 = scalar_lea.hbm %s1011_s14, 256  ;;  %s737_s8 = scalar_lea.hbm %s1060_s5, 512 }
 0x2ed   : > { %p734_p5 = scmp.ne.s32.totalorder %s1011_s14, %s733_s13  ;;  %p738_p0 = scmp.lt.u32.totalorder %s1011_s14, %s1060_s5 }
 0x2ee   : > { %p739_p1 = scmp.lt.u32.totalorder %s737_s8, %s733_s13  ;;  %p741_p6 = scmp.lt.u32.totalorder %s733_s13, %s1011_s14 }
 0x2ef   : > { %p735_p8 = pnand %p734_p5, %p1075_p11 }
 0x2f0   : > { %p740_p3 = por %p739_p1, %p738_p0 }
 0x2f1   : > { %p736_p9 = pneg %p735_p8 }
 0x2f2   : > { %p742_p12 = por %p741_p6, %p740_p3 }
 0x2f4   : > { %p743_p13 = pnand %p742_p12, %p736_p9 }
 0x2f6   : > { %746 = shalt.err (!%p743_p13)
}
 0x2f7   : > { %628 = dma.vmem_to_hbm [thread:$0]  (%p1075_p11), %s1013_s23, 256, %s1011_s14, %s492_s22  }
 0x2f8 PF: > { %s518_s10 = sand.u32 1, %s773_s18   ;;  %p1076_p7 = scmp.ne.s32.totalorder %s1065_s6, 0 }
 0x2f9   : > { %p1077_p10 = scmp.ge.s32.totalorder %s785_s21, 2  ;;  %s519_s11 = scalar_lea.sflag [#allocation4], %s518_s10 }
 0x2fb   : > { %p635_p2 = pnand %p1077_p10, %p1076_p7 }
 0x2fd   : > { %768 = dma.done.wait (!%p635_p2), %s519_s11, 256  }
 0x2fe   : > { %770 = vsyncadd (!%p635_p2), %s519_s11, 4294967040  ;;  %p18_p4 = scmp.ge.s32.totalorder %s849_s24, 4   ;;  %s1078_s18 = smov %s777_s19 }
 0x2ff   : > { %s1079_s19 = smov %s781_s20  ;;  %s1080_s20 = smov %s861_s27 }
 0x300   : > { %s1081_s21 = smov %s849_s24  ;;  %20 = sbr.rel (!%p18_p4) target bundleno = 5 (0x5), region = 85 }
 0x307   :  { %524 = vsyncpa [#allocation3], 1 }
 0x308   :  { %526 = vsyncpa [#allocation3 + $0x1], 1 }
 0x309   :  { %527 = vsyncpa [#allocation4], 1 }
 0x30a   :  { %529 = vsyncpa [#allocation4 + $0x1], 1 }

</bundles_post_ra>
